<compile_context>
chip_gen: v5e
topology: v5e:2x2
jax: 0.10.0
libtpu: 0.0.40
codegen_flags: <defaults>
</compile_context>

<pallas_src>
import functools

import jax
import jax.numpy as jnp
from jax import lax
from jax.experimental import pallas as pl
from jax.experimental.pallas import tpu as pltpu

LANES = 128
_VMEM_BUDGET = 12 * 1024 * 1024   # double-buffered input bytes, fits all gens


# --------------------------------------------------------------------------
# UpliftWrapper forward (linear logit head)
# --------------------------------------------------------------------------
def _pick_batch_tile(batch, feat, itemsize):
    """Largest multiple-of-128 divisor of batch whose double-buffered x tile
    stays under the VMEM budget; prefers >=2 grid steps (v7x megacore)."""
    cap = _VMEM_BUDGET // (2 * max(feat, 1) * itemsize)
    cap = max(LANES, min(cap, 8192))
    hi = min(batch, cap)
    cands = [tm for tm in range(LANES, hi + 1, LANES) if batch % tm == 0]
    if not cands:
        return batch                      # small / odd batch: one full block
    two_step = [tm for tm in cands if batch // tm >= 2]
    return max(two_step) if two_step else max(cands)


def _uplift_fwd_kernel(x_ref, w_ref, scal_ref, t_ref, uplift_ref, pred_ref):
    x = x_ref[...]                        # (tm, L)  features
    w = w_ref[...]                        # (1,  L)  head weights, same dtype
    # MXU: contract the lane (feature) dim -> (1, tm) scores, batch on lanes.
    s0 = lax.dot_general(w, x, (((1,), (1,)), ((), ())),
                         preferred_element_type=jnp.float32)
    s0 = s0 + scal_ref[0]                 # + bias            (SMEM scalar)
    s1 = s0 + scal_ref[1]                 # + treatment weight (SMEM scalar)
    y0 = jax.nn.sigmoid(s0)               # EUP exp on a lane-dense slab
    y1 = jax.nn.sigmoid(s1)
    uplift_ref[...] = (y1 - y0).astype(uplift_ref.dtype)
    # Exact spec semantics (torch.where(t == 1, y1, y0)); with the lane-dense
    # layout the compare+select is negligible, so no need for y0 + t*uplift.
    pred_ref[...] = jnp.where(t_ref[...] == 1.0, y1, y0).astype(pred_ref.dtype)


def uplift_forward(x, t, w, b):
    """Pallas forward for UpliftWrapper with a linear logit head.

    x: (B, L) float32 or bfloat16 features (dtype is respected: bf16 in ->
       bf16 MXU dot with f32 accumulation).
    t: (B,) or (B, 1) treatment indicator in {0, 1}.
    w: (L + 1,) weights of the head applied to concat([x, treatment]).
    b: scalar bias.
    Returns {'uplift': (B,), 'pred': (B,)} (float32).
    """
    if t.ndim == 2:
        t = t.reshape(-1)
    B, L = x.shape
    tm = _pick_batch_tile(B, L, x.dtype.itemsize)
    grid = (B // tm,)

    w_row = w[:L].astype(x.dtype).reshape(1, L)
    scal = jnp.stack([jnp.asarray(b, jnp.float32),      # (2,) -> SMEM
                      w[L].astype(jnp.float32)])
    t2 = t.astype(jnp.float32).reshape(1, B)             # free view

    x_spec = pl.BlockSpec((tm, L), lambda i: (i, 0))
    w_spec = pl.BlockSpec((1, L), lambda i: (0, 0))
    scal_spec = pl.BlockSpec((2,), lambda i: (0,),
                             memory_space=pltpu.MemorySpace.SMEM)
    row_spec = pl.BlockSpec((1, tm), lambda i: (0, i))   # lane-dense blocks

    uplift, pred = pl.pallas_call(
        _uplift_fwd_kernel,
        out_shape=(jax.ShapeDtypeStruct((1, B), jnp.float32),
                   jax.ShapeDtypeStruct((1, B), jnp.float32)),
        grid_spec=pltpu.PrefetchScalarGridSpec(
            num_scalar_prefetch=0,
            grid=grid,
            in_specs=[x_spec, w_spec, scal_spec, row_spec],
            out_specs=[row_spec, row_spec],
            scratch_shapes=[]),
        compiler_params=pltpu.CompilerParams(
            dimension_semantics=("parallel",)),
    )(x, w_row, scal, t2)

    return {"uplift": uplift.reshape(B), "pred": pred.reshape(B)}


# --------------------------------------------------------------------------
# DirectUpliftLoss (companion loss)
# --------------------------------------------------------------------------
def _pick_loss_tile(rows, bytes_per_lane):
    cap = _VMEM_BUDGET // (2 * LANES * bytes_per_lane)
    cap = max(8, min(cap, 4096))
    hi = min(rows, cap)
    cands = [r for r in range(8, hi + 1, 8) if rows % r == 0]
    if not cands:
        return rows
    pref = [r for r in cands if rows // r >= 2]
    return max(pref) if pref else max(cands)


def _duloss_kernel(u_ref, p_ref, t_ref, y_ref, sq_ref, bce_ref,
                   acc_sq, acc_bce, *, e_x, binary_labels, fold):
    i = pl.program_id(1)

    @pl.when(i == 0)
    def _():
        acc_sq[...] = jnp.zeros_like(acc_sq)
        acc_bce[...] = jnp.zeros_like(acc_bce)

    u = u_ref[...]
    p = p_ref[...]
    t = t_ref[...].astype(jnp.float32)
    y = y_ref[...].astype(jnp.float32)

    # z = t*y/e - (1-t)*y/(1-e)  ==  y * (t*(c0+c1) - c1)
    c0 = 1.0 / e_x
    c1 = 1.0 / (1.0 - e_x)
    z = y * (t * (c0 + c1) - c1)
    diff = u - z
    sq = diff * diff

    if binary_labels:
        # exact for y in {0, 1}: one log instead of two
        q = jnp.where(y > 0.5, p, 1.0 - p)
        bce = -jnp.maximum(jnp.log(q), -100.0)
    else:
        log_p = jnp.maximum(jnp.log(p), -100.0)
        log_1mp = jnp.maximum(jnp.log(1.0 - p), -100.0)
        bce = -(y * log_p + (1.0 - y) * log_1mp)

    if fold:
        # (tile,128) -> (tile//8, 8, 128) keeps the native (8,128) tiling, so
        # the reshape is free and the axis-0 sum is plain VPU adds; the running
        # accumulators stay vreg-resident at (8, 128) instead of tile-sized.
        r = sq.shape[0]
        sq = jnp.sum(sq.reshape(r // 8, 8, LANES), axis=0)
        bce = jnp.sum(bce.reshape(r // 8, 8, LANES), axis=0)
    acc_sq[...] = acc_sq[...] + sq
    acc_bce[...] = acc_bce[...] + bce

    @pl.when(i == pl.num_programs(1) - 1)
    def _():
        sq_ref[0, 0] = jnp.sum(acc_sq[...])
        bce_ref[0, 0] = jnp.sum(acc_bce[...])


def direct_uplift_loss(uplift, pred, t, y, propensity_score=0.5, alpha=0.5,
                       return_all=True, binary_labels=True):
    """uplift/pred/t/y: (BATCH,) arrays, BATCH % 128 == 0.

    binary_labels=True assumes t and y are exactly {0, 1}: labels travel as
    bf16 and BCE uses the single-log form (exact for binary labels; do NOT
    pass soft labels with this flag set).
    """
    batch = uplift.shape[0]
    assert batch % LANES == 0, "batch must be a multiple of 128"
    rows = batch // LANES

    lab_bytes = 2 if binary_labels else 4
    tile = _pick_loss_tile(rows, 8 + 2 * lab_bytes)
    steps_total = rows // tile
    nsplit = 2 if (steps_total % 2 == 0 and steps_total >= 2) else 1
    steps_per_core = steps_total // nsplit
    fold = (tile % 8 == 0)
    acc_rows = 8 if fold else tile

    use_bf16 = binary_labels and (tile % 16 == 0)
    lab_dtype = jnp.bfloat16 if use_bf16 else jnp.float32

    uplift2 = uplift.astype(jnp.float32).reshape(rows, LANES)
    pred2 = pred.astype(jnp.float32).reshape(rows, LANES)
    t2 = t.astype(lab_dtype).reshape(rows, LANES)
    y2 = y.astype(lab_dtype).reshape(rows, LANES)

    def in_map(c, i):
        return (c * steps_per_core + i, 0)

    tile_spec = pl.BlockSpec((tile, LANES), in_map)
    part_spec = pl.BlockSpec((1, 1), lambda c, i: (c, 0),
                             memory_space=pltpu.MemorySpace.SMEM)

    kernel = functools.partial(_duloss_kernel, e_x=propensity_score,
                               binary_labels=binary_labels, fold=fold)

    sq_part, bce_part = pl.pallas_call(
        kernel,
        out_shape=(jax.ShapeDtypeStruct((nsplit, 1), jnp.float32),
                   jax.ShapeDtypeStruct((nsplit, 1), jnp.float32)),
        grid_spec=pltpu.PrefetchScalarGridSpec(
            num_scalar_prefetch=0,
            grid=(nsplit, steps_per_core),
            in_specs=[tile_spec, tile_spec, tile_spec, tile_spec],
            out_specs=[part_spec, part_spec],
            scratch_shapes=[pltpu.VMEM((acc_rows, LANES), jnp.float32),
                            pltpu.VMEM((acc_rows, LANES), jnp.float32)]),
        compiler_params=pltpu.CompilerParams(
            dimension_semantics=("parallel", "arbitrary")),
    )(uplift2, pred2, t2, y2)

    # Per-core partials combined on the host-side XLA graph (tiny scalars).
    inv_n = 1.0 / float(batch)
    lu = jnp.sum(sq_part) * inv_n
    lp = jnp.sum(bce_part) * inv_n
    loss = (1.0 - alpha) * lu + alpha * lp
    if return_all:
        return loss, (lu, lp)
    return loss


def _loss_reference(uplift, pred, t, y, e_x=0.5, alpha=0.5):
    z = t * y / e_x - (1 - t) * y / (1 - e_x)
    lu = jnp.mean((uplift - z) ** 2)
    lp = jnp.mean(-(y * jnp.log(pred) + (1 - y) * jnp.log(1 - pred)))
    return (1 - alpha) * lu + alpha * lp, lu, lp


if __name__ == "__main__":
    key = jax.random.PRNGKey(0)
    k_x, k_t, k_w, k_b, k_u, k_p, k_ty, k_yy = jax.random.split(key, 8)

    # ---------------- UpliftWrapper forward ----------------
    B, L = 256, 128
    x = jax.random.normal(k_x, (B, L), dtype=jnp.float32)
    t = jax.random.bernoulli(k_t, 0.5, (B,)).astype(jnp.float32)
    w = jax.random.normal(k_w, (L + 1,), dtype=jnp.float32) * 0.1
    b = jax.random.normal(k_b, (), dtype=jnp.float32) * 0.1

    out = uplift_forward(x, t, w, b)
    jax.block_until_ready(out)

    logits0 = x @ w[:L] + b
    y0_ref = jax.nn.sigmoid(logits0)
    y1_ref = jax.nn.sigmoid(logits0 + w[L])
    ref_uplift = y1_ref - y0_ref
    ref_pred = jnp.where(t == 1.0, y1_ref, y0_ref)
    # MXU matmul precision may differ slightly from the XLA reference dot.
    assert jnp.allclose(out["uplift"], ref_uplift, rtol=0, atol=1e-2)
    assert jnp.allclose(out["pred"], ref_pred, rtol=0, atol=1e-2)

    # bf16 feature path (halves HBM traffic of the dominant x stream).
    out_bf16 = uplift_forward(x.astype(jnp.bfloat16), t, w, b)
    jax.block_until_ready(out_bf16)
    assert jnp.allclose(out_bf16["uplift"], ref_uplift, rtol=0, atol=3e-2)
    assert jnp.allclose(out_bf16["pred"], ref_pred, rtol=0, atol=3e-2)

    # ---------------- DirectUpliftLoss ----------------
    BATCH = 4096
    uplift_v = jax.random.normal(k_u, (BATCH,), dtype=jnp.float32)
    pred_v = jax.nn.sigmoid(jax.random.normal(k_p, (BATCH,), dtype=jnp.float32))
    t_v = jax.random.bernoulli(k_ty, 0.5, (BATCH,)).astype(jnp.float32)
    y_v = jax.random.bernoulli(k_yy, 0.3, (BATCH,)).astype(jnp.float32)

    loss, (loss_u, loss_p) = direct_uplift_loss(uplift_v, pred_v, t_v, y_v,
                                                return_all=True)
    jax.block_until_ready((loss, loss_u, loss_p))

    ref_loss, ref_lu, ref_lp = _loss_reference(uplift_v, pred_v, t_v, y_v)
    assert jnp.allclose(loss, ref_loss, rtol=1e-4, atol=1e-5)
    assert jnp.allclose(loss_u, ref_lu, rtol=1e-4, atol=1e-5)
    assert jnp.allclose(loss_p, ref_lp, rtol=1e-4, atol=1e-5)

    print("KERNEL_OK")
</pallas_src>

<mosaic_0001>
module attributes {stable_mosaic.version = 11 : i64} {
  func.func @_uplift_fwd_kernel(%arg0: i32, %arg1: memref<128x128xf32, #tpu.memory_space<vmem>>, %arg2: memref<1x128xf32, #tpu.memory_space<vmem>>, %arg3: memref<2xf32, #tpu.memory_space<smem>>, %arg4: memref<1x128xf32, #tpu.memory_space<vmem>>, %arg5: memref<1x128xf32, #tpu.memory_space<vmem>>, %arg6: memref<1x128xf32, #tpu.memory_space<vmem>>) attributes {dimension_semantics = [#tpu.dimension_semantics<parallel>], iteration_bounds = array<i64: 2>, scalar_prefetch = 0 : i64, scratch_operands = 0 : i64, tpu.core_type = #tpu.core_type<tc>, window_params = [{transform_indices = @transform_0, window_bounds = array<i64: 128, 128>}, {pipeline_mode = #tpu.pipeline_mode<synchronous>, transform_indices = @transform_1, window_bounds = array<i64: 1, 128>}, {transform_indices = @transform_2, window_bounds = array<i64: 2>}, {transform_indices = @transform_3, window_bounds = array<i64: 1, 128>}, {transform_indices = @transform_4, window_bounds = array<i64: 1, 128>}, {transform_indices = @transform_5, window_bounds = array<i64: 1, 128>}]} {
    %c0 = arith.constant 0 : index
    %c0_0 = arith.constant 0 : index
    %0 = vector.load %arg1[%c0, %c0_0] : memref<128x128xf32, #tpu.memory_space<vmem>>, vector<128x128xf32>
    %c0_1 = arith.constant 0 : index
    %c0_2 = arith.constant 0 : index
    %1 = vector.load %arg2[%c0_1, %c0_2] : memref<1x128xf32, #tpu.memory_space<vmem>>, vector<1x128xf32>
    %cst = arith.constant dense<0.000000e+00> : vector<1x128xf32>
    %2 = tpu.matmul %1, %0, %cst {dimension_numbers = #tpu.dot_dimension_numbers<[1], [1], [0], [0], [0, 0, 1, 0], [], []>} : vector<1x128xf32>, vector<128x128xf32>, vector<1x128xf32> -> vector<1x128xf32>
    %c0_3 = arith.constant 0 : index
    %3 = memref.load %arg3[%c0_3] : memref<2xf32, #tpu.memory_space<smem>>
    %4 = vector.broadcast %3 : f32 to vector<1x128xf32>
    %5 = arith.addf %2, %4 : vector<1x128xf32>
    %c1 = arith.constant 1 : index
    %6 = memref.load %arg3[%c1] : memref<2xf32, #tpu.memory_space<smem>>
    %7 = vector.broadcast %6 : f32 to vector<1x128xf32>
    %8 = arith.addf %5, %7 : vector<1x128xf32>
    %9 = arith.negf %5 : vector<1x128xf32>
    %10 = math.exp %9 : vector<1x128xf32>
    %cst_4 = arith.constant 1.000000e+00 : f32
    %11 = vector.broadcast %cst_4 : f32 to vector<1x128xf32>
    %12 = arith.addf %11, %10 : vector<1x128xf32>
    %13 = arith.divf %11, %12 : vector<1x128xf32>
    %14 = arith.negf %8 : vector<1x128xf32>
    %15 = math.exp %14 : vector<1x128xf32>
    %cst_5 = arith.constant 1.000000e+00 : f32
    %16 = vector.broadcast %cst_5 : f32 to vector<1x128xf32>
    %17 = arith.addf %16, %15 : vector<1x128xf32>
    %18 = arith.divf %16, %17 : vector<1x128xf32>
    %19 = arith.subf %18, %13 : vector<1x128xf32>
    %c0_6 = arith.constant 0 : index
    %c0_7 = arith.constant 0 : index
    %20 = vector.load %arg5[%c0_6, %c0_7] : memref<1x128xf32, #tpu.memory_space<vmem>>, vector<1x128xf32>
    tpu.vector_store %arg5[%c0_6, %c0_7], %19 {strides = array<i32>} : memref<1x128xf32, #tpu.memory_space<vmem>>, vector<1x128xf32>,
    %c0_8 = arith.constant 0 : index
    %c0_9 = arith.constant 0 : index
    %21 = vector.load %arg4[%c0_8, %c0_9] : memref<1x128xf32, #tpu.memory_space<vmem>>, vector<1x128xf32>
    %cst_10 = arith.constant 1.000000e+00 : f32
    %22 = vector.broadcast %cst_10 : f32 to vector<1x128xf32>
    %23 = arith.cmpf oeq, %21, %22 : vector<1x128xf32>
    %24 = arith.select %23, %18, %13 : vector<1x128xi1>, vector<1x128xf32>
    %c0_11 = arith.constant 0 : index
    %c0_12 = arith.constant 0 : index
    %25 = vector.load %arg6[%c0_11, %c0_12] : memref<1x128xf32, #tpu.memory_space<vmem>>, vector<1x128xf32>
    tpu.vector_store %arg6[%c0_11, %c0_12], %24 {strides = array<i32>} : memref<1x128xf32, #tpu.memory_space<vmem>>, vector<1x128xf32>,
    return
  }
  func.func @transform_0(%arg0: i32) -> (i32, i32) {
    %c0_i32 = arith.constant 0 : i32
    %c0_i32_0 = arith.constant 0 : i32
    return %arg0, %c0_i32 : i32, i32
  }
  func.func @transform_1(%arg0: i32) -> (i32, i32) {
    %c0_i32 = arith.constant 0 : i32
    %c0_i32_0 = arith.constant 0 : i32
    %c0_i32_1 = arith.constant 0 : i32
    return %c0_i32, %c0_i32_0 : i32, i32
  }
  func.func @transform_2(%arg0: i32) -> i32 {
    %c0_i32 = arith.constant 0 : i32
    %c0_i32_0 = arith.constant 0 : i32
    return %c0_i32 : i32
  }
  func.func @transform_3(%arg0: i32) -> (i32, i32) {
    %c0_i32 = arith.constant 0 : i32
    %c0_i32_0 = arith.constant 0 : i32
    return %c0_i32, %arg0 : i32, i32
  }
  func.func @transform_4(%arg0: i32) -> (i32, i32) {
    %c0_i32 = arith.constant 0 : i32
    %c0_i32_0 = arith.constant 0 : i32
    return %c0_i32, %arg0 : i32, i32
  }
  func.func @transform_5(%arg0: i32) -> (i32, i32) {
    %c0_i32 = arith.constant 0 : i32
    %c0_i32_0 = arith.constant 0 : i32
    return %c0_i32, %arg0 : i32, i32
  }
}

</mosaic_0001>

<bundles_post_ra>
// kernel: tpu_custom_call.1
= control target key start
LH: loop header
LB: loop body
LE: loop exit
PB: predicated region body
PF: predicated region fallthrough
CT: control target
= control target key end

     0   :  { %s1069_s0 = inlined_call_operand.hbm [shape: f32[256,128], index: 0, kind: input, shape index: {}]   ;;  %s1070_s1 = inlined_call_operand.hbm [shape: f32[1,128], index: 1, kind: input, shape index: {}]   ;;  %s1071_s2 = inlined_call_operand.hbm [shape: f32[2], index: 2, kind: input, shape index: {}]   ;;  %s1072_s3 = inlined_call_operand.vmem [shape: f32[1,256], index: 3, kind: input, shape index: {}]   ;;  %s1073_s4 = inlined_call_operand.hbm [shape: f32[1,256], index: 4, kind: output, shape index: {0}]   ;;  %s1074_s5 = inlined_call_operand.hbm [shape: f32[1,256], index: 5, kind: output, shape index: {1}]  }
   0x1   :  { %1075 = sst [smem:[#allocation17_spill]] %s1070_s1 }
   0x2   :  { %1076 = sst [smem:[#allocation18_spill]] %s1071_s2 }
   0x3   :  { %11 = vsyncpa [#allocation3], 0 }
   0x4   :  { %13 = vsyncpa [#allocation3 + $0x1], 0 }
   0x5   :  { %14 = vsyncpa [#allocation7], 0 }
   0x6   :  { %15 = vsyncpa [#allocation5], 0 }
   0x7   :  { %16 = vsyncpa [#allocation4], 0 }
   0x8   :  { %18 = vsyncpa [#allocation4 + $0x1], 0 }
   0x9   :  { %19 = vsyncpa [#allocation11], 0 }
   0xa   :  { %21 = vsyncpa [#allocation11 + $0x1], 0  ;;  %s856_s18 = smov 0   ;;  %s858_s19 = smov 0  }
   0xb   :  { %s860_s20 = smov 0   ;;  %s862_s21 = smov 0  }
   0xc LB: > { %s877_s22 = sadd.s32 4294967295, %s820_s21   ;;  %s539_s23 = sadd.s32 4294967294, %s820_s21   ;;  %s820_s21 = sphi %s862_s21, %s1091_s21   ;;  %s816_s20 = sphi %s860_s20, %s1090_s20   ;;  %s812_s19 = sphi %s858_s19, %s1089_s19   ;;  %s808_s18 = sphi %s856_s18, %s1088_s18  }
   0xd   : > { %s881_s24 = sadd.s32 1, %s820_s21   ;;  %s34_s25 = sadd.s32 1, %s816_s20 }
   0xe   : > { %s31_s26 = ssub.s32 %s820_s21, %s881_s24  ;;  %p41_p0 = scmp.ne.s32.totalorder %s816_s20, %s812_s19 }
   0xf   : > { %p32_p1 = scmp.eq.s32.totalorder %s31_s26, 0  ;;  %p42_p2 = scmp.eq.s32.totalorder %s820_s21, 0 }
  0x10   : > { %p47_p3 = scmp.ne.s32.totalorder %s812_s19, %s808_s18  ;;  %p48_p4 = scmp.eq.s32.totalorder %s877_s22, 0 }
  0x11   : > { %s893_s27 = scalar_select %p32_p1, %s816_s20, %s34_s25  }
  0x12   : > { %p895_p5 = por %p42_p2, %p41_p0  ;;  %p901_p6 = por %p48_p4, %p47_p3 }
  0x13   : > { %p139_p7 = scmp.eq.s32.totalorder %s877_s22, 1  ;;  %p145_p8 = scmp.eq.s32.totalorder %s539_s23, 1 }
  0x14   : > { %p540_p9 = scmp.ge.s32.totalorder %s820_s21, 1  ;;  %p178_p10 = scmp.lt.s32.totalorder %s820_s21, 3 }
  0x15   : > { %p908_p11 = por %p139_p7, %p41_p0  ;;  %p912_p12 = por %p145_p8, %p47_p3 }
  0x16   : > { %p916_p13 = pnand %p540_p9, %p178_p10  ;;  %s1082_s1 = sld [smem:[#allocation17_spill]] }
  0x17   : > { %s822_s11 = smov [#allocation6]   ;;  %p591_p3 = scmp.lt.s32.totalorder %s820_s21, 2 }
  0x18   : > { %p571_p1 = pneg %p916_p13  ;;  %s192_s12 = sshll.u32 %s822_s11, 4  ;;  %s193_s12 = int_to_ptr.vmem [resolvable:$true] %s192_s12 }
  0x19   : > { %s1083_s2 = sld [smem:[#allocation18_spill]]  ;;  %p934_p7 = pnand %p591_p3, %p895_p5 }
  0x1a   : > { %p572_p2 = pnand %p571_p1, %p48_p4  ;;  %s823_s17 = smov [#allocation8]  }
  0x1b   : > { %s213_s23 = sand.u32 1, %s816_s20   ;;  %s556_s26 = sshll.u32 %s820_s21, 7 }
  0x1c   : > { %s190_s10 = sshll.u32 %s1082_s1, 4  ;;  %s544_s25 = sshll.u32 %s213_s23, 7  ;;  %s191_s10 = int_to_ptr.hbm [resolvable:$true] %s190_s10 }
  0x1d   : > { %574 = dma.hbm_to_vmem [thread:$0]  (!%p572_p2), %s191_s10, 16, %s193_s12, [#allocation7]  }
  0x1e   : > { %s222_s11 = scalar_lea.hbm %s1069_s0, %s556_s26  ;;  %s217_s1 = scalar_lea.vmem [#allocation2], %s544_s25 }
  0x1f   : > { %s202_s15 = sshll.u32 %s1083_s2, 4  ;;  %s225_s13 = sshll.u32 %s217_s1, 4  ;;  %s203_s15 = int_to_ptr.hbm [resolvable:$true] %s202_s15  ;;  %s226_s13 = int_to_ptr.vmem [resolvable:$true] %s225_s13 }
  0x20   : > { %577 = dma.hbm_to_smem (!%p572_p2), %s203_s15, 16, %s823_s17, [#allocation5]  }
  0x21   : > { %s223_s14 = sshll.u32 %s222_s11, 4  ;;  %s214_s28 = scalar_lea.sflag [#allocation3], %s213_s23  ;;  %s224_s14 = int_to_ptr.hbm [resolvable:$true] %s223_s14 }
  0x22   : > { %s684_s10 = sshra.s32 %s224_s14, 4  ;;  %p688_p8 = pneg %p934_p7  ;;  %s685_s10 = int_to_ptr.hbm [resolvable:$true] %s684_s10 }
  0x23   : > { %s686_s12 = scalar_lea.hbm %s685_s10, 128  ;;  %s691_s2 = scalar_lea.hbm %s1069_s0, 256 }
  0x24   : > { %p687_p5 = scmp.ne.s32.totalorder %s685_s10, %s686_s12  ;;  %p692_p1 = scmp.lt.s32.totalorder %s685_s10, %s1069_s0 }
  0x25   : > { %p693_p2 = scmp.lt.s32.totalorder %s691_s2, %s686_s12 }
  0x26   : > { %p689_p9 = pnand %p688_p8, %p687_p5 }
  0x27   : > { %p694_p3 = por %p693_p2, %p692_p1 }
  0x28   : > { %p690_p10 = pneg %p689_p9 }
  0x2a   : > { %p695_p0 = pnand %p694_p3, %p690_p10 }
  0x2c   : > { %698 = shalt.err (!%p695_p0)
}
  0x2d   : > { %s824_s1 = smov 128   ;;  %s825_s23 = smov 8  }
  0x2e   : > { %581 = dma.hbm_to_vmem [thread:$0]  (!%p934_p7), %s224_s14, 2048, %s226_s13, %s214_s28, %s824_s1, %s824_s1, %s825_s23  }
  0x2f   : > { %243 = sbr.rel (%p916_p13) target bundleno = 298 (0x12a), region = 36  ;;  %s956_s25 = sand.u32 (!%p916_p13), 1, %s812_s19  }
  0x30   : > { %s548_s9 = sshll.u32 (!%p916_p13), %s956_s25, 7  ;;  %s246_s11 = scalar_lea.sflag (!%p916_p13), [#allocation3], %s956_s25 }
  0x31   : > { %s960_s2 = scalar_lea.vmem (!%p916_p13), [#allocation2], %s548_s9 }
  0x34   : > { %787 = dma.done.wait (%p901_p6), %s246_s11, 2048  }
  0x35   : > { %789 = vsyncadd (%p901_p6), %s246_s11, 4294965248 }
  0x36   : > { %791 = dma.done.wait (%p48_p4), [#allocation7], 16  }
  0x37   : > { %793 = vsyncadd (%p48_p4), [#allocation7], 4294967280 }
  0x38   : > { %795 = dma.done.wait (%p48_p4), [#allocation5], 16  }
  0x39   : > { %797 = vsyncadd (%p48_p4), [#allocation5], 4294967280 }
  0x3a   : > { %265 = sfence }
  0x3b   : > { %v313_v0 = vld [vmem:[%s960_s2 + $0x78] sm:$0xff]  ;;  %v312_v1 = vld [vmem:[%s960_s2 + $0x70] sm:$0xff]  ;;  %v311_v2 = vld [vmem:[%s960_s2 + $0x68] sm:$0xff]  ;;  %s315_s29 = sld [smem:[#allocation8]]  ;;  %p295_p4 = scmp.lt.s32.totalorder %s877_s22, 1 }
  0x3c   : > { %317 = vmatpush.xpose.msra.mxu0 %v313_v0  ;;  %v310_v3 = vld [vmem:[%s960_s2 + $0x60] sm:$0xff]  ;;  %v309_v4 = vld [vmem:[%s960_s2 + $0x58] sm:$0xff]  ;;  %v308_v5 = vld [vmem:[%s960_s2 + $0x50] sm:$0xff]  ;;  %s551_s7 = sld [smem:[#allocation8 + $0x1]]  ;;  %s410_s15 = scalar_lea.hbm %s1074_s5, %s877_s22 }
  0x3d   : > { %v307_v6 = vld [vmem:[%s960_s2 + $0x48] sm:$0xff]  ;;  %v306_v7 = vld [vmem:[%s960_s2 + $0x40] sm:$0xff]  ;;  %v305_v8 = vld [vmem:[%s960_s2 + $0x38] sm:$0xff]  ;;  %s296_s16 = scalar_select %p295_p4, %s877_s22, 1 }
  0x3e   : > { %v304_v9 = vld [vmem:[%s960_s2 + $0x30] sm:$0xff]  ;;  %v303_v10 = vld [vmem:[%s960_s2 + $0x28] sm:$0xff]  ;;  %v302_v11 = vld [vmem:[%s960_s2 + $0x20] sm:$0xff]  ;;  %s397_s26 = scalar_lea.hbm %s1073_s4, %s877_s22  ;;  %s293_s1 = scalar_lea.vmem [#allocation10], %s956_s25 }
  0x3f   : > { %v301_v12 = vld [vmem:[%s960_s2 + $0x18] sm:$0xff]  ;;  %v300_v13 = vld [vmem:[%s960_s2 + $0x10] sm:$0xff]  ;;  %v299_v14 = vld [vmem:[%s960_s2 + $0x8] sm:$0xff]  ;;  %s297_s28 = scalar_lea.vmem %s1072_s3, %s296_s16  ;;  %s1010_s23 = sshll.u32 %s293_s1, 4  ;;  %s413_s23 = int_to_ptr.vmem [resolvable:$true] %s1010_s23 }
  0x40   : > { %318 = vmatpush.xpose.msra.mxu0 %v312_v1  ;;  %v298_v15 = vld [vmem:[%s960_s2] sm:$0xff]  ;;  %s1012_s9 = sshll.u32 %s410_s15, 4  ;;  %s287_s22 = scalar_lea.vmem [#allocation9], %s956_s25  ;;  %s415_s9 = int_to_ptr.hbm [resolvable:$true] %s1012_s9 }
  0x41   : > { %v314_v16 = vld [vmem:[#allocation6] sm:$0x1]  ;;  %v316_v17 = vstv %s315_s29  ;;  %s1015_s11 = sshll.u32 %s287_s22, 4  ;;  %s1017_s2 = sshll.u32 %s397_s26, 4  ;;  %s400_s11 = int_to_ptr.vmem [resolvable:$true] %s1015_s11  ;;  %s402_s2 = int_to_ptr.hbm [resolvable:$true] %s1017_s2 }
  0x42   : > { %v338_v19 = vstv %s551_s7  ;;  %v380_v41 = vld [vmem:[%s297_s28] sm:$0x1]  ;;  %s389_s29 = scalar_lea.sflag [#allocation11], %s956_s25  ;;  %s728_s7 = sshra.s32 %s415_s9, 4  ;;  %s729_s7 = int_to_ptr.hbm [resolvable:$true] %s728_s7 }
  0x43   : > { %vm381_vm6 = vcmp.eq.f32.partialorder %v380_v41, 1.0  ;;  %s730_s16 = scalar_lea.hbm %s729_s7, 1  ;;  %s734_s28 = scalar_lea.hbm %s1074_s5, 2 }
  0x44   : > { %319 = vmatpush.xpose.msra.mxu0 %v311_v2  ;;  %p731_p6 = scmp.ne.s32.totalorder %s729_s7, %s730_s16  ;;  %p735_p7 = scmp.lt.s32.totalorder %s729_s7, %s1074_s5 }
  0x45   : > { %p736_p5 = scmp.lt.s32.totalorder %s734_s28, %s730_s16 }
  0x46   : > { %p732_p13 = pnand %p731_p6, %p908_p11 }
  0x47   : > { %p737_p8 = por %p736_p5, %p735_p7 }
  0x48   : > { %320 = vmatpush.xpose.msra.mxu0 %v310_v3  ;;  %p733_p0 = pneg %p732_p13 }
  0x4a   : > { %p738_p9 = pnand %p737_p8, %p733_p0 }
  0x4c   : > { %321 = vmatpush.xpose.msra.mxu0 %v309_v4 }
  0x50   : > { %322 = vmatpush.xpose.msra.mxu0 %v308_v5 }
  0x54   : > { %323 = vmatpush.xpose.msra.mxu0 %v307_v6 }
  0x58   : > { %324 = vmatpush.xpose.msra.mxu0 %v306_v7 }
  0x5c   : > { %325 = vmatpush.xpose.msra.mxu0 %v305_v8 }
  0x60   : > { %326 = vmatpush.xpose.msra.mxu0 %v304_v9 }
  0x64   : > { %327 = vmatpush.xpose.msra.mxu0 %v303_v10 }
  0x68   : > { %328 = vmatpush.xpose.msra.mxu0 %v302_v11 }
  0x6c   : > { %329 = vmatpush.xpose.msra.mxu0 %v301_v12 }
  0x70   : > { %330 = vmatpush.xpose.msra.mxu0 %v300_v13 }
  0x74   : > { %331 = vmatpush.xpose.msra.mxu0 %v299_v14 }
  0x78   : > { %332 = vmatpush.xpose.msra.mxu0 %v298_v15 }
  0x7b   : > { %333 = vmatmul.f32.vlgmr.msra.gmra.mxu0 %v314_v16 }
  0xf8   : > { %v334_v18 = vpop.f32.mrf.mxu0 }
  0xf9   : > { %v335_v20 = vadd.f32 %v334_v18, %v316_v17 }
  0xfb   : > { %v339_v21 = vadd.f32 %v338_v19, %v335_v20  ;;  %v552_v22 = vmul.f32 -1.442695, %v335_v20 }
  0xfd   : > { %631 = vpow2.f32 %v552_v22  ;;  %v553_v23 = vmul.f32 -1.442695, %v339_v21 }
  0xff   : > { %633 = vpow2.f32 %v553_v23 }
 0x103   : > { %v632_v24 = vpop.eup %631 }
 0x104   : > { %v343_v25 = vadd.f32 1.0, %v632_v24 }
 0x105   : > { %v634_v26 = vpop.eup %633 }
 0x106   : > { %635 = vrcp.f32 %v343_v25  ;;  %v362_v27 = vadd.f32 1.0, %v634_v26  ;;  %vm349_vm1 = vweird.f32 %v343_v25  ;;  %v353_v35 = vand.u32 2147483647, %v343_v25 }
 0x107   : > { %v355_v36 = vand.u32 2147483648, %v343_v25 }
 0x108   : > { %637 = vrcp.f32 %v362_v27  ;;  %v374_v37 = vand.u32 2147483648, %v362_v27  ;;  %v372_v40 = vand.u32 2147483647, %v362_v27  ;;  %vm368_vm4 = vweird.f32 %v362_v27 }
 0x109   : > { %v356_v45 = vor.u32 1.1754944e-38, %v355_v36  ;;  %vm354_vm7 = vcmp.eq.f32.partialorder %v353_v35, 8.507059e+37 }
 0x10a   : > { %v375_v46 = vor.u32 1.1754944e-38, %v374_v37  ;;  %vm373_vm8 = vcmp.eq.f32.partialorder %v372_v40, 8.507059e+37 }
 0x10c   : > { %v636_v28 = vpop.eup %635 }
 0x10d   : > { %v345_v29 = vmul.f32 %v636_v28, %v343_v25  ;;  %vm350_vm0 = vweird.f32 %v636_v28 }
 0x10e   : > { %v638_v30 = vpop.eup %637  ;;  %vm1003_vm3 = vmor %vm349_vm1, %vm350_vm0 }
 0x10f   : > { %v346_v31 = vsub.f32 1.0, %v345_v29  ;;  %v364_v32 = vmul.f32 %v638_v30, %v362_v27  ;;  %vm369_vm2 = vweird.f32 %v638_v30 }
 0x110   : > { %vm370_vm5 = vmor %vm368_vm4, %vm369_vm2 }
 0x111   : > { %v347_v33 = vmul.f32 %v636_v28, %v346_v31  ;;  %v365_v34 = vsub.f32 1.0, %v364_v32 }
 0x113   : > { %v348_v38 = vadd.f32 %v636_v28, %v347_v33  ;;  %v366_v39 = vmul.f32 %v638_v30, %v365_v34 }
 0x115   : > { %v352_v43 = vsel %vm1003_vm3, %v636_v28, %v348_v38  ;;  %v367_v44 = vadd.f32 %v638_v30, %v366_v39 }
 0x116   : > { %v357_v48 = vsel %vm354_vm7, %v356_v45, %v352_v43 }
 0x117   : > { %v371_v47 = vsel %vm370_vm5, %v638_v30, %v367_v44 }
 0x118   : > { %v376_v49 = vsel %vm373_vm8, %v375_v46, %v371_v47 }
 0x119   : > { %v378_v50 = vsub.f32 %v376_v49, %v357_v48  ;;  %v382_v51 = vsel %vm381_vm6, %v376_v49, %v357_v48 }
 0x11a   : > { %383 = vst [vmem:[%s293_s1] sm:$0x1] %v382_v51 }
 0x11b   : > { %379 = vst [vmem:[%s287_s22] sm:$0x1] %v378_v50 }
 0x11c   : > { %741 = shalt.err (!%p738_p9)
}
 0x11d   : > { %568 = dma.vmem_to_hbm [thread:$0]  (%p908_p11), %s413_s23, 16, %s415_s9, %s389_s29  }
 0x11e   : > { %s385_s15 = scalar_lea.sflag [#allocation4], %s956_s25  ;;  %s756_s17 = sshra.s32 %s402_s2, 4  ;;  %s757_s17 = int_to_ptr.hbm [resolvable:$true] %s756_s17 }
 0x11f   : > { %s758_s8 = scalar_lea.hbm %s757_s17, 1  ;;  %s762_s22 = scalar_lea.hbm %s1073_s4, 2 }
 0x120   : > { %p759_p10 = scmp.ne.s32.totalorder %s757_s17, %s758_s8  ;;  %p763_p3 = scmp.lt.s32.totalorder %s757_s17, %s1073_s4 }
 0x121   : > { %p764_p4 = scmp.lt.s32.totalorder %s762_s22, %s758_s8 }
 0x122   : > { %p760_p1 = pnand %p759_p10, %p908_p11 }
 0x123   : > { %p765_p6 = por %p764_p4, %p763_p3 }
 0x124   : > { %p761_p2 = pneg %p760_p1 }
 0x126   : > { %p766_p13 = pnand %p765_p6, %p761_p2 }
 0x128   : > { %769 = shalt.err (!%p766_p13)
}
 0x129   : > { %567 = dma.vmem_to_hbm [thread:$0]  (%p908_p11), %s400_s11, 16, %s402_s2, %s385_s15  }
 0x12a PF: > { %s426_s25 = sand.u32 1, %s808_s18   ;;  %p1087_p0 = scmp.ge.s32.totalorder %s820_s21, 2 }
 0x12b   : > { %s427_s23 = scalar_lea.sflag [#allocation4], %s426_s25 }
 0x12c   : > { %p583_p7 = pnand %p1087_p0, %p912_p12 }
 0x12e   : > { %p584_p5 = pneg %p583_p7 }
 0x130   : > { %799 = dma.done.wait (%p584_p5), %s427_s23, 16  }
 0x131   : > { %801 = vsyncadd (%p584_p5), %s427_s23, 4294967280  ;;  %s436_s9 = scalar_lea.sflag [#allocation11], %s426_s25 }
 0x132   : > { %803 = dma.done.wait (%p584_p5), %s436_s9, 16  }
 0x133   : > { %805 = vsyncadd (%p584_p5), %s436_s9, 4294967280  ;;  %p24_p11 = scmp.ge.s32.totalorder %s881_s24, 4   ;;  %s1088_s18 = smov %s812_s19 }
 0x134   : > { %s1089_s19 = smov %s816_s20  ;;  %s1090_s20 = smov %s893_s27 }
 0x135   : > { %s1091_s21 = smov %s881_s24  ;;  %26 = sbr.rel (!%p24_p11) target bundleno = 12 (0xc), region = 110 }
 0x13a   :  { %441 = vsyncpa [#allocation3], 1 }
 0x13b   :  { %443 = vsyncpa [#allocation3 + $0x1], 1 }
 0x13c   :  { %444 = vsyncpa [#allocation7], 1 }
 0x13d   :  { %445 = vsyncpa [#allocation4], 1 }
 0x13e   :  { %447 = vsyncpa [#allocation4 + $0x1], 1 }
 0x13f   :  { %448 = vsyncpa [#allocation11], 1 }
 0x140   :  { %450 = vsyncpa [#allocation11 + $0x1], 1 }
 0x141   :  { %451 = vsyncpa [#allocation5], 1 }
 0x142   :  { %453 = vsyncpa [#allocation5 + $0x1], 1 }

</bundles_post_ra>
